<compile_context>
chip_gen: v5e
topology: v5e:2x2
jax: 0.10.0
libtpu: 0.0.40
codegen_flags: <defaults>
</compile_context>

<pallas_src>
import functools

import jax
import jax.numpy as jnp
from jax.experimental import pallas as pl
from jax.experimental.pallas import tpu as pltpu

BN_EPS = 1e-5
LEAKY_SLOPE = 0.2
LANE = 128  # pad Cout to a multiple of the 128-wide lane dim for dense stores


# --------------------------------------------------------------------------
# Kernel 1: conv tile (MXU) + per-tile streaming BN statistics.
# --------------------------------------------------------------------------
def _conv_stats_kernel(x_ref, w_ref, y_ref, st_ref, *, kt, th, wo, cin2, cpad):
    """One (batch, row-tile) grid step.

    x_ref : (1, Hs, Ws, cin2)     space-to-depth image (resident across row tiles)
    w_ref : (kt, kt, cin2, cpad)  rearranged weights (resident)
    y_ref : (1, th, wo, cpad)     conv output tile (lane-dense f32)
    st_ref: (1, 1, 2, cpad)       per-tile [sum(y), sum(y*y)]
    """
    ho0 = pl.program_id(1) * th
    acc = jnp.zeros((th * wo, cpad), jnp.float32)
    # kt*kt taps, each a contiguous (th, wo, cin2) window -> MXU matmul,
    # accumulated in f32.  For tiny cin2 this under-fills the MXU, but the
    # kernel is HBM-bound, so DMA bytes -- not FLOPs -- are the target.
    for ah in range(kt):
        for aw in range(kt):
            tap = x_ref[0, pl.ds(ho0 + ah, th), pl.ds(aw, wo), :]  # (th, wo, cin2)
            acc = acc + jnp.dot(tap.reshape(th * wo, cin2), w_ref[ah, aw],
                                preferred_element_type=jnp.float32)
    y_ref[...] = acc.reshape(1, th, wo, cpad)
    # Streaming stats (sum, sum of squares): conv output is touched once here.
    s1 = jnp.sum(acc, axis=0, keepdims=True)         # (1, cpad)
    s2 = jnp.sum(acc * acc, axis=0, keepdims=True)   # (1, cpad)
    st_ref[0, 0, :, :] = jnp.concatenate([s1, s2], axis=0)


# --------------------------------------------------------------------------
# Kernel 2: lane-dense elementwise finalize: y*scale + shift, LeakyReLU(0.2).
# --------------------------------------------------------------------------
def _bn_lrelu_kernel(y_ref, scale_ref, shift_ref, o_ref):
    scale = scale_ref[...].reshape(1, 1, 1, -1)
    shift = shift_ref[...].reshape(1, 1, 1, -1)
    z = y_ref[...] * scale + shift
    o_ref[...] = jnp.where(z > 0, z, LEAKY_SLOPE * z)


# --------------------------------------------------------------------------
# Wrapper-side layout helpers (pure data movement, no duplication).
# --------------------------------------------------------------------------
def _space_to_depth(x_nhwc, s):
    """(N,H,W,C) -> (N,H//s,W//s,s*s*C), channel order (ph, pw, c)."""
    if s == 1:
        return x_nhwc
    n, h, w, c = x_nhwc.shape
    hc, wc = (h // s) * s, (w // s) * s
    x = x_nhwc[:, :hc, :wc, :]
    x = x.reshape(n, hc // s, s, wc // s, s, c)
    x = jnp.transpose(x, (0, 1, 3, 2, 4, 5))
    return x.reshape(n, hc // s, wc // s, s * s * c)


def _rearrange_weight(w_oihw, s, cpad):
    """OIHW -> (k//s, k//s, s*s*Cin, cpad) matching the space-to-depth order."""
    cout, cin, kh, _ = w_oihw.shape
    kt = kh // s
    w = jnp.transpose(w_oihw, (2, 3, 1, 0))            # (kh, kw, cin, cout)
    w = w.reshape(kt, s, kt, s, cin, cout)             # (ah, ph, aw, pw, cin, cout)
    w = jnp.transpose(w, (0, 2, 1, 3, 4, 5))           # (ah, aw, ph, pw, cin, cout)
    w = w.reshape(kt, kt, s * s * cin, cout)
    return jnp.pad(w, ((0, 0), (0, 0), (0, 0), (0, cpad - cout)))


def _pick_row_tile(ho, wo, cpad, max_rows=None, budget_bytes=2 * 1024 * 1024):
    """Largest divisor of `ho` whose double-buffered f32 output tile fits budget.

    Budget is deliberately small so the same tiling is safe on v7x (64 MiB
    physical / 32 MiB scoped VMEM), not just v5e/v6e.
    """
    bytes_per_row = max(wo, 8) * cpad * 4
    cap = max(1, budget_bytes // (2 * bytes_per_row))
    if max_rows is not None:
        cap = min(cap, max_rows)
    th = 1
    for d in range(1, ho + 1):
        if ho % d == 0 and d <= cap:
            th = d
    return th


# --------------------------------------------------------------------------
# Forward pass.
# --------------------------------------------------------------------------
@functools.partial(jax.jit, static_argnums=(4, 5))
def conv_block_forward(x_nchw, weight_oihw, gamma, beta, stride,
                       max_rows_per_tile=None):
    """ConvBlock forward.  x_nchw: (N, Cin, H, W) -> (N, Cout, Ho, Wo)."""
    n, cin, h, w = x_nchw.shape
    cout, _, ksize, _ = weight_oihw.shape
    s = stride
    if ksize % s != 0:
        # TODO(synk): strides that do not divide the kernel size need a
        # strided-gather path; discriminator ConvBlocks use stride in {1, 2}.
        raise NotImplementedError("stride must divide the kernel size (4)")

    ho = (h - ksize) // s + 1
    wo = (w - ksize) // s + 1
    kt = ksize // s
    cin2 = s * s * cin
    cpad = ((cout + LANE - 1) // LANE) * LANE

    x_nhwc = jnp.transpose(x_nchw, (0, 2, 3, 1))
    xs = _space_to_depth(x_nhwc, s)                     # (N, Hs, Ws, cin2)
    hs, ws = xs.shape[1], xs.shape[2]
    w_taps = _rearrange_weight(weight_oihw, s, cpad)    # (kt, kt, cin2, cpad)

    th = _pick_row_tile(ho, wo, cpad, max_rows_per_tile)
    t = ho // th
    grid = (n, t)
    cparams = pltpu.CompilerParams(
        dimension_semantics=("parallel", "parallel"),
        vmem_limit_bytes=32 * 1024 * 1024)

    kernel1 = functools.partial(_conv_stats_kernel,
                                kt=kt, th=th, wo=wo, cin2=cin2, cpad=cpad)
    y, stats = pl.pallas_call(
        kernel1,
        grid=grid,
        in_specs=[
            pl.BlockSpec((1, hs, ws, cin2), lambda i, j: (i, 0, 0, 0)),
            pl.BlockSpec((kt, kt, cin2, cpad), lambda i, j: (0, 0, 0, 0)),
        ],
        out_specs=[
            pl.BlockSpec((1, th, wo, cpad), lambda i, j: (i, j, 0, 0)),
            pl.BlockSpec((1, 1, 2, cpad), lambda i, j: (i, j, 0, 0)),
        ],
        out_shape=[
            jax.ShapeDtypeStruct((n, ho, wo, cpad), jnp.float32),
            jax.ShapeDtypeStruct((n, t, 2, cpad), jnp.float32),
        ],
        compiler_params=cparams,
        cost_estimate=pl.CostEstimate(
            flops=2 * n * ho * wo * kt * kt * cin2 * cpad,
            transcendentals=0,
            bytes_accessed=4 * (n * hs * ws * cin2 + n * ho * wo * cpad)),
    )(xs, w_taps)

    # Finalize train-mode BatchNorm stats (tiny per-channel reduction) and fold
    # gamma/beta so kernel 2 is a single fused multiply-add (broadcasts hoisted).
    m_count = n * ho * wo
    tot = jnp.sum(stats, axis=(0, 1))                   # (2, cpad)
    mean = tot[0] / m_count
    var = jnp.maximum(tot[1] / m_count - mean * mean, 0.0)  # guard cancellation
    inv = jax.lax.rsqrt(var + BN_EPS)
    gamma_p = jnp.pad(gamma.astype(jnp.float32), (0, cpad - cout))
    beta_p = jnp.pad(beta.astype(jnp.float32), (0, cpad - cout))
    scale = (gamma_p * inv).reshape(1, cpad)
    shift = (beta_p - mean * gamma_p * inv).reshape(1, cpad)

    out = pl.pallas_call(
        _bn_lrelu_kernel,
        grid=grid,
        in_specs=[
            pl.BlockSpec((1, th, wo, cpad), lambda i, j: (i, j, 0, 0)),
            pl.BlockSpec((1, cpad), lambda i, j: (0, 0)),
            pl.BlockSpec((1, cpad), lambda i, j: (0, 0)),
        ],
        out_specs=pl.BlockSpec((1, th, wo, cpad), lambda i, j: (i, j, 0, 0)),
        out_shape=jax.ShapeDtypeStruct((n, ho, wo, cpad), jnp.float32),
        compiler_params=cparams,
    )(y, scale, shift)

    # Drop lane padding, back to NCHW.
    return jnp.transpose(out[..., :cout], (0, 3, 1, 2))


# --------------------------------------------------------------------------
# Pure-JAX reference mirroring the PyTorch forward (train-mode BN).
# --------------------------------------------------------------------------
def _reference(x_nchw, weight_oihw, gamma, beta, stride):
    y = jax.lax.conv_general_dilated(
        x_nchw, weight_oihw, window_strides=(stride, stride), padding="VALID",
        dimension_numbers=("NCHW", "OIHW", "NCHW"))
    mean = y.mean(axis=(0, 2, 3), keepdims=True)
    var = ((y - mean) ** 2).mean(axis=(0, 2, 3), keepdims=True)
    y = (y - mean) / jnp.sqrt(var + BN_EPS)
    y = y * gamma.reshape(1, -1, 1, 1) + beta.reshape(1, -1, 1, 1)
    return jnp.where(y > 0, y, LEAKY_SLOPE * y)


if __name__ == "__main__":
    key = jax.random.PRNGKey(0)
    k_x, k_w, k_x2, k_w2 = jax.random.split(key, 4)

    # Case 1: ConvBlock(input_channels=4, output_channels=8, stride=2).
    n, cin, hh, ww = 2, 4, 18, 18
    cout, ksize, stride = 8, 4, 2
    x = jax.random.normal(k_x, (n, cin, hh, ww), dtype=jnp.float32)
    wgt = 0.1 * jax.random.normal(k_w, (cout, cin, ksize, ksize), dtype=jnp.float32)
    gamma = 1.5 * jnp.ones((cout,), jnp.float32)
    beta = 0.1 * jnp.ones((cout,), jnp.float32)

    out = jax.block_until_ready(conv_block_forward(x, wgt, gamma, beta, stride, None))
    ref = _reference(x, wgt, gamma, beta, stride)
    assert out.shape == ref.shape, (out.shape, ref.shape)
    assert jnp.allclose(out, ref, atol=1e-4, rtol=1e-4), \
        float(jnp.max(jnp.abs(out - ref)))

    # Case 2: larger spatial extent with a forced multi-tile row grid, which
    # exercises the pipelined tiling and the cross-tile BN reduction.
    n2, c2, h2, w2 = 2, 4, 50, 50
    x2 = jax.random.normal(k_x2, (n2, c2, h2, w2), dtype=jnp.float32)
    w2_ = 0.1 * jax.random.normal(k_w2, (cout, c2, ksize, ksize), dtype=jnp.float32)
    g2 = jnp.ones((cout,), jnp.float32)
    b2 = jnp.zeros((cout,), jnp.float32)

    out2 = jax.block_until_ready(conv_block_forward(x2, w2_, g2, b2, 2, 8))
    ref2 = _reference(x2, w2_, g2, b2, 2)
    assert out2.shape == ref2.shape, (out2.shape, ref2.shape)
    assert jnp.allclose(out2, ref2, atol=1e-4, rtol=1e-4), \
        float(jnp.max(jnp.abs(out2 - ref2)))

    print("KERNEL_OK")
</pallas_src>

<mosaic_0001>
module attributes {stable_mosaic.version = 11 : i64} {
  func.func @_conv_stats_kernel(%arg0: i32, %arg1: i32, %arg2: memref<1x9x9x16xf32, #tpu.memory_space<vmem>>, %arg3: memref<2x2x16x128xf32, #tpu.memory_space<vmem>>, %arg4: memref<1x8x8x128xf32, #tpu.memory_space<vmem>>, %arg5: memref<1x1x2x128xf32, #tpu.memory_space<vmem>>) attributes {dimension_semantics = [#tpu.dimension_semantics<parallel>, #tpu.dimension_semantics<parallel>], iteration_bounds = array<i64: 2, 1>, scalar_prefetch = 0 : i64, scratch_operands = 0 : i64, tpu.core_type = #tpu.core_type<tc>, window_params = [{transform_indices = @transform_0, window_bounds = array<i64: 1, 9, 9, 16>}, {pipeline_mode = #tpu.pipeline_mode<synchronous>, transform_indices = @transform_1, window_bounds = array<i64: 2, 2, 16, 128>}, {transform_indices = @transform_2, window_bounds = array<i64: 1, 8, 8, 128>}, {transform_indices = @transform_3, window_bounds = array<i64: 1, 1, 2, 128>}]} {
    %c8_i32 = arith.constant 8 : i32
    %0 = arith.muli %arg1, %c8_i32 : i32
    %cst = arith.constant 0.000000e+00 : f32
    %1 = vector.broadcast %cst : f32 to vector<64x128xf32>
    %c0_i32 = arith.constant 0 : i32
    %2 = arith.addi %0, %c0_i32 : i32
    %c0 = arith.constant 0 : index
    %3 = arith.index_cast %2 : i32 to index
    %c0_0 = arith.constant 0 : index
    %c0_1 = arith.constant 0 : index
    %4 = vector.load %arg2[%c0, %3, %c0_0, %c0_1] : memref<1x9x9x16xf32, #tpu.memory_space<vmem>>, vector<1x8x8x16xf32>
    %5 = vector.shape_cast %4 : vector<1x8x8x16xf32> to vector<8x8x16xf32>
    %6 = vector.shape_cast %5 : vector<8x8x16xf32> to vector<64x16xf32>
    %c0_2 = arith.constant 0 : index
    %c0_3 = arith.constant 0 : index
    %c0_4 = arith.constant 0 : index
    %c0_5 = arith.constant 0 : index
    %7 = vector.load %arg3[%c0_2, %c0_3, %c0_4, %c0_5] : memref<2x2x16x128xf32, #tpu.memory_space<vmem>>, vector<1x1x16x128xf32>
    %8 = vector.shape_cast %7 : vector<1x1x16x128xf32> to vector<16x128xf32>
    %cst_6 = arith.constant dense<0.000000e+00> : vector<64x128xf32>
    %9 = tpu.matmul %6, %8, %cst_6 {dimension_numbers = #tpu.dot_dimension_numbers<[1], [0], [0], [1], [0, 0, 1, 1], [], []>} : vector<64x16xf32>, vector<16x128xf32>, vector<64x128xf32> -> vector<64x128xf32>
    %10 = arith.addf %1, %9 : vector<64x128xf32>
    %c0_i32_7 = arith.constant 0 : i32
    %11 = arith.addi %0, %c0_i32_7 : i32
    %c0_8 = arith.constant 0 : index
    %12 = arith.index_cast %11 : i32 to index
    %c1 = arith.constant 1 : index
    %c0_9 = arith.constant 0 : index
    %13 = vector.load %arg2[%c0_8, %12, %c1, %c0_9] : memref<1x9x9x16xf32, #tpu.memory_space<vmem>>, vector<1x8x8x16xf32>
    %14 = vector.shape_cast %13 : vector<1x8x8x16xf32> to vector<8x8x16xf32>
    %15 = vector.shape_cast %14 : vector<8x8x16xf32> to vector<64x16xf32>
    %c0_10 = arith.constant 0 : index
    %c1_11 = arith.constant 1 : index
    %c0_12 = arith.constant 0 : index
    %c0_13 = arith.constant 0 : index
    %16 = vector.load %arg3[%c0_10, %c1_11, %c0_12, %c0_13] : memref<2x2x16x128xf32, #tpu.memory_space<vmem>>, vector<1x1x16x128xf32>
    %17 = vector.shape_cast %16 : vector<1x1x16x128xf32> to vector<16x128xf32>
    %cst_14 = arith.constant dense<0.000000e+00> : vector<64x128xf32>
    %18 = tpu.matmul %15, %17, %cst_14 {dimension_numbers = #tpu.dot_dimension_numbers<[1], [0], [0], [1], [0, 0, 1, 1], [], []>} : vector<64x16xf32>, vector<16x128xf32>, vector<64x128xf32> -> vector<64x128xf32>
    %19 = arith.addf %10, %18 : vector<64x128xf32>
    %c1_i32 = arith.constant 1 : i32
    %20 = arith.addi %0, %c1_i32 : i32
    %c0_15 = arith.constant 0 : index
    %21 = arith.index_cast %20 : i32 to index
    %c0_16 = arith.constant 0 : index
    %c0_17 = arith.constant 0 : index
    %22 = vector.load %arg2[%c0_15, %21, %c0_16, %c0_17] : memref<1x9x9x16xf32, #tpu.memory_space<vmem>>, vector<1x8x8x16xf32>
    %23 = vector.shape_cast %22 : vector<1x8x8x16xf32> to vector<8x8x16xf32>
    %24 = vector.shape_cast %23 : vector<8x8x16xf32> to vector<64x16xf32>
    %c1_18 = arith.constant 1 : index
    %c0_19 = arith.constant 0 : index
    %c0_20 = arith.constant 0 : index
    %c0_21 = arith.constant 0 : index
    %25 = vector.load %arg3[%c1_18, %c0_19, %c0_20, %c0_21] : memref<2x2x16x128xf32, #tpu.memory_space<vmem>>, vector<1x1x16x128xf32>
    %26 = vector.shape_cast %25 : vector<1x1x16x128xf32> to vector<16x128xf32>
    %cst_22 = arith.constant dense<0.000000e+00> : vector<64x128xf32>
    %27 = tpu.matmul %24, %26, %cst_22 {dimension_numbers = #tpu.dot_dimension_numbers<[1], [0], [0], [1], [0, 0, 1, 1], [], []>} : vector<64x16xf32>, vector<16x128xf32>, vector<64x128xf32> -> vector<64x128xf32>
    %28 = arith.addf %19, %27 : vector<64x128xf32>
    %c1_i32_23 = arith.constant 1 : i32
    %29 = arith.addi %0, %c1_i32_23 : i32
    %c0_24 = arith.constant 0 : index
    %30 = arith.index_cast %29 : i32 to index
    %c1_25 = arith.constant 1 : index
    %c0_26 = arith.constant 0 : index
    %31 = vector.load %arg2[%c0_24, %30, %c1_25, %c0_26] : memref<1x9x9x16xf32, #tpu.memory_space<vmem>>, vector<1x8x8x16xf32>
    %32 = vector.shape_cast %31 : vector<1x8x8x16xf32> to vector<8x8x16xf32>
    %33 = vector.shape_cast %32 : vector<8x8x16xf32> to vector<64x16xf32>
    %c1_27 = arith.constant 1 : index
    %c1_28 = arith.constant 1 : index
    %c0_29 = arith.constant 0 : index
    %c0_30 = arith.constant 0 : index
    %34 = vector.load %arg3[%c1_27, %c1_28, %c0_29, %c0_30] : memref<2x2x16x128xf32, #tpu.memory_space<vmem>>, vector<1x1x16x128xf32>
    %35 = vector.shape_cast %34 : vector<1x1x16x128xf32> to vector<16x128xf32>
    %cst_31 = arith.constant dense<0.000000e+00> : vector<64x128xf32>
    %36 = tpu.matmul %33, %35, %cst_31 {dimension_numbers = #tpu.dot_dimension_numbers<[1], [0], [0], [1], [0, 0, 1, 1], [], []>} : vector<64x16xf32>, vector<16x128xf32>, vector<64x128xf32> -> vector<64x128xf32>
    %37 = arith.addf %28, %36 : vector<64x128xf32>
    %38 = vector.shape_cast %37 : vector<64x128xf32> to vector<1x8x8x128xf32>
    %c0_32 = arith.constant 0 : index
    %c0_33 = arith.constant 0 : index
    %c0_34 = arith.constant 0 : index
    %c0_35 = arith.constant 0 : index
    %39 = vector.load %arg4[%c0_32, %c0_33, %c0_34, %c0_35] : memref<1x8x8x128xf32, #tpu.memory_space<vmem>>, vector<1x8x8x128xf32>
    tpu.vector_store %arg4[%c0_32, %c0_33, %c0_34, %c0_35], %38 {strides = array<i32>} : memref<1x8x8x128xf32, #tpu.memory_space<vmem>>, vector<1x8x8x128xf32>,
    %cst_36 = arith.constant dense<0.000000e+00> : vector<128xf32>
    %40 = vector.multi_reduction <add>, %37, %cst_36 [0] : vector<64x128xf32> to vector<128xf32>
    %41 = vector.shape_cast %40 : vector<128xf32> to vector<1x128xf32>
    %42 = arith.mulf %37, %37 : vector<64x128xf32>
    %cst_37 = arith.constant dense<0.000000e+00> : vector<128xf32>
    %43 = vector.multi_reduction <add>, %42, %cst_37 [0] : vector<64x128xf32> to vector<128xf32>
    %44 = vector.shape_cast %43 : vector<128xf32> to vector<1x128xf32>
    %45 = tpu.concatenate %41, %44 in 0 : vector<1x128xf32>, vector<1x128xf32> -> vector<2x128xf32>
    %c0_38 = arith.constant 0 : index
    %c0_39 = arith.constant 0 : index
    %c0_40 = arith.constant 0 : index
    %c0_41 = arith.constant 0 : index
    %46 = vector.load %arg5[%c0_38, %c0_39, %c0_40, %c0_41] : memref<1x1x2x128xf32, #tpu.memory_space<vmem>>, vector<1x1x2x128xf32>
    %47 = vector.shape_cast %46 : vector<1x1x2x128xf32> to vector<2x128xf32>
    %48 = vector.shape_cast %45 : vector<2x128xf32> to vector<1x1x2x128xf32>
    tpu.vector_store %arg5[%c0_38, %c0_39, %c0_40, %c0_41], %48 {strides = array<i32>} : memref<1x1x2x128xf32, #tpu.memory_space<vmem>>, vector<1x1x2x128xf32>,
    return
  }
  func.func @transform_0(%arg0: i32, %arg1: i32) -> (i32, i32, i32, i32) {
    %c0_i32 = arith.constant 0 : i32
    %c0_i32_0 = arith.constant 0 : i32
    %c0_i32_1 = arith.constant 0 : i32
    %c0_i32_2 = arith.constant 0 : i32
    return %arg0, %c0_i32, %c0_i32_0, %c0_i32_1 : i32, i32, i32, i32
  }
  func.func @transform_1(%arg0: i32, %arg1: i32) -> (i32, i32, i32, i32) {
    %c0_i32 = arith.constant 0 : i32
    %c0_i32_0 = arith.constant 0 : i32
    %c0_i32_1 = arith.constant 0 : i32
    %c0_i32_2 = arith.constant 0 : i32
    %c0_i32_3 = arith.constant 0 : i32
    return %c0_i32, %c0_i32_0, %c0_i32_1, %c0_i32_2 : i32, i32, i32, i32
  }
  func.func @transform_2(%arg0: i32, %arg1: i32) -> (i32, i32, i32, i32) {
    %c0_i32 = arith.constant 0 : i32
    %c0_i32_0 = arith.constant 0 : i32
    %c0_i32_1 = arith.constant 0 : i32
    return %arg0, %arg1, %c0_i32, %c0_i32_0 : i32, i32, i32, i32
  }
  func.func @transform_3(%arg0: i32, %arg1: i32) -> (i32, i32, i32, i32) {
    %c0_i32 = arith.constant 0 : i32
    %c0_i32_0 = arith.constant 0 : i32
    %c0_i32_1 = arith.constant 0 : i32
    return %arg0, %arg1, %c0_i32, %c0_i32_0 : i32, i32, i32, i32
  }
}

module attributes {stable_mosaic.version = 11 : i64} {
  func.func @_bn_lrelu_kernel(%arg0: i32, %arg1: i32, %arg2: memref<1x8x8x128xf32, #tpu.memory_space<vmem>>, %arg3: memref<1x128xf32, #tpu.memory_space<vmem>>, %arg4: memref<1x128xf32, #tpu.memory_space<vmem>>, %arg5: memref<1x8x8x128xf32, #tpu.memory_space<vmem>>) attributes {dimension_semantics = [#tpu.dimension_semantics<parallel>, #tpu.dimension_semantics<parallel>], iteration_bounds = array<i64: 2, 1>, scalar_prefetch = 0 : i64, scratch_operands = 0 : i64, tpu.core_type = #tpu.core_type<tc>, window_params = [{transform_indices = @transform_0, window_bounds = array<i64: 1, 8, 8, 128>}, {pipeline_mode = #tpu.pipeline_mode<synchronous>, transform_indices = @transform_1, window_bounds = array<i64: 1, 128>}, {pipeline_mode = #tpu.pipeline_mode<synchronous>, transform_indices = @transform_2, window_bounds = array<i64: 1, 128>}, {transform_indices = @transform_3, window_bounds = array<i64: 1, 8, 8, 128>}]} {
    %c0 = arith.constant 0 : index
    %c0_0 = arith.constant 0 : index
    %0 = vector.load %arg3[%c0, %c0_0] : memref<1x128xf32, #tpu.memory_space<vmem>>, vector<1x128xf32>
    %1 = vector.shape_cast %0 : vector<1x128xf32> to vector<1x1x1x128xf32>
    %c0_1 = arith.constant 0 : index
    %c0_2 = arith.constant 0 : index
    %2 = vector.load %arg4[%c0_1, %c0_2] : memref<1x128xf32, #tpu.memory_space<vmem>>, vector<1x128xf32>
    %3 = vector.shape_cast %2 : vector<1x128xf32> to vector<1x1x1x128xf32>
    %c0_3 = arith.constant 0 : index
    %c0_4 = arith.constant 0 : index
    %c0_5 = arith.constant 0 : index
    %c0_6 = arith.constant 0 : index
    %4 = vector.load %arg2[%c0_3, %c0_4, %c0_5, %c0_6] : memref<1x8x8x128xf32, #tpu.memory_space<vmem>>, vector<1x8x8x128xf32>
    %5 = vector.broadcast %1 : vector<1x1x1x128xf32> to vector<1x8x8x128xf32>
    %6 = arith.mulf %4, %5 : vector<1x8x8x128xf32>
    %7 = vector.broadcast %3 : vector<1x1x1x128xf32> to vector<1x8x8x128xf32>
    %8 = arith.addf %6, %7 : vector<1x8x8x128xf32>
    %cst = arith.constant 0.000000e+00 : f32
    %9 = vector.broadcast %cst : f32 to vector<1x8x8x128xf32>
    %10 = arith.cmpf ogt, %8, %9 : vector<1x8x8x128xf32>
    %cst_7 = arith.constant 2.000000e-01 : f32
    %11 = vector.broadcast %cst_7 : f32 to vector<1x8x8x128xf32>
    %12 = arith.mulf %11, %8 : vector<1x8x8x128xf32>
    %13 = arith.select %10, %8, %12 : vector<1x8x8x128xi1>, vector<1x8x8x128xf32>
    %c0_8 = arith.constant 0 : index
    %c0_9 = arith.constant 0 : index
    %c0_10 = arith.constant 0 : index
    %c0_11 = arith.constant 0 : index
    %14 = vector.load %arg5[%c0_8, %c0_9, %c0_10, %c0_11] : memref<1x8x8x128xf32, #tpu.memory_space<vmem>>, vector<1x8x8x128xf32>
    tpu.vector_store %arg5[%c0_8, %c0_9, %c0_10, %c0_11], %13 {strides = array<i32>} : memref<1x8x8x128xf32, #tpu.memory_space<vmem>>, vector<1x8x8x128xf32>,
    return
  }
  func.func @transform_0(%arg0: i32, %arg1: i32) -> (i32, i32, i32, i32) {
    %c0_i32 = arith.constant 0 : i32
    %c0_i32_0 = arith.constant 0 : i32
    %c0_i32_1 = arith.constant 0 : i32
    return %arg0, %arg1, %c0_i32, %c0_i32_0 : i32, i32, i32, i32
  }
  func.func @transform_1(%arg0: i32, %arg1: i32) -> (i32, i32) {
    %c0_i32 = arith.constant 0 : i32
    %c0_i32_0 = arith.constant 0 : i32
    %c0_i32_1 = arith.constant 0 : i32
    return %c0_i32, %c0_i32_0 : i32, i32
  }
  func.func @transform_2(%arg0: i32, %arg1: i32) -> (i32, i32) {
    %c0_i32 = arith.constant 0 : i32
    %c0_i32_0 = arith.constant 0 : i32
    %c0_i32_1 = arith.constant 0 : i32
    return %c0_i32, %c0_i32_0 : i32, i32
  }
  func.func @transform_3(%arg0: i32, %arg1: i32) -> (i32, i32, i32, i32) {
    %c0_i32 = arith.constant 0 : i32
    %c0_i32_0 = arith.constant 0 : i32
    %c0_i32_1 = arith.constant 0 : i32
    return %arg0, %arg1, %c0_i32, %c0_i32_0 : i32, i32, i32, i32
  }
}

</mosaic_0001>

<bundles_post_ra>
// kernel: conv_block_forward.3
= control target key start
LH: loop header
LB: loop body
LE: loop exit
PB: predicated region body
PF: predicated region fallthrough
CT: control target
= control target key end

     0   :  { %s444_s12 = smov 0   ;;  %s446_s13 = smov 0   ;;  %s493_s0 = inlined_call_operand.vmem [shape: f32[2,8,8,128], index: 0, kind: input, shape index: {}]   ;;  %s494_s1 = inlined_call_operand.vmem [shape: f32[1,128], index: 1, kind: input, shape index: {}]   ;;  %s495_s2 = inlined_call_operand.vmem [shape: f32[1,128], index: 2, kind: input, shape index: {}]   ;;  %s496_s3 = inlined_call_operand.vmem [shape: f32[2,8,8,128], index: 3, kind: output, shape index: {}]  }
   0x1   :  { %s448_s14 = smov 0  }
   0x2 LB: > { %s25_s15 = sadd.s32 1, %s418_s13  ;;  %p365_p0 = scmp.ge.s32.totalorder %s422_s14, 1  ;;  %s422_s14 = sphi %s448_s14, %s13_s14   ;;  %s418_s13 = sphi %s446_s13, %s498_s13   ;;  %s414_s12 = sphi %s444_s12, %s497_s12  }
   0x3   : > { %p27_p1 = scmp.ge.s32.totalorder %s25_s15, 2  ;;  %p158_p2 = scmp.lt.s32.totalorder %s422_s14, 3 }
   0x5   : > { %s500_s15 = smov (%p27_p1, %s25_s15), 0  ;;  %p159_p3 = pnand %p365_p0, %p158_p2 }
   0x6   : > { %p191_p4 = scmp.lt.s32.totalorder (!%p159_p3), %s414_s12, 1 }
   0x7   : > { %162 = sbr.rel (%p159_p3) target bundleno = 31 (0x1f), region = 32 }
   0xc   : > { %s502_s12 = smov (!%p191_p4, %s414_s12), 1  ;;  %v398_v0 = vld [vmem:[%s494_s1] ss:$0 sm:$0xff] }
   0xd   : > { %s372_s18 = sshll.u32 %s502_s12, 6  ;;  %v399_v1 = vld [vmem:[%s495_s2] ss:$0 sm:$0xff] }
   0xe   : > { %s198_s21 = scalar_lea.vmem %s493_s0, %s372_s18  ;;  %s474_s26 = scalar_lea.vmem %s496_s3, %s372_s18 }
   0xf   : > { %v212_v2 = vld [vmem:[%s198_s21] sm:$0xff]  ;;  %v213_v3 = vld [vmem:[%s198_s21 + $0x8] sm:$0xff]  ;;  %v214_v4 = vld [vmem:[%s198_s21 + $0x10] sm:$0xff] }
  0x10   : > { %v223_v5 = vmul.f32 %v398_v0, %v212_v2  ;;  %v224_v6 = vmul.f32 %v398_v0, %v213_v3  ;;  %v225_v7 = vmul.f32 %v398_v0, %v214_v4  ;;  %v215_v8 = vld [vmem:[%s198_s21 + $0x18] sm:$0xff]  ;;  %v216_v9 = vld [vmem:[%s198_s21 + $0x20] sm:$0xff]  ;;  %v217_v10 = vld [vmem:[%s198_s21 + $0x28] sm:$0xff] }
  0x11   : > { %v226_v11 = vmul.f32 %v398_v0, %v215_v8  ;;  %v227_v12 = vmul.f32 %v398_v0, %v216_v9  ;;  %v228_v13 = vmul.f32 %v398_v0, %v217_v10  ;;  %v218_v14 = vld [vmem:[%s198_s21 + $0x30] sm:$0xff]  ;;  %v219_v15 = vld [vmem:[%s198_s21 + $0x38] sm:$0xff] }
  0x12   : > { %v234_v16 = vadd.f32 %v399_v1, %v223_v5  ;;  %v235_v17 = vadd.f32 %v399_v1, %v224_v6  ;;  %v236_v18 = vadd.f32 %v399_v1, %v225_v7  ;;  %v229_v19 = vmul.f32 %v398_v0, %v218_v14 }
  0x13   : > { %v237_v20 = vadd.f32 %v399_v1, %v226_v11  ;;  %v238_v21 = vadd.f32 %v399_v1, %v227_v12  ;;  %v239_v22 = vadd.f32 %v399_v1, %v228_v13  ;;  %v230_v23 = vmul.f32 %v398_v0, %v219_v15 }
  0x14   : > { %vm242_vm0 = vcmp.gt.f32.partialorder %v234_v16, 0.0  ;;  %v250_v24 = vmul.f32 0.2, %v234_v16  ;;  %vm243_vm1 = vcmp.gt.f32.partialorder %v235_v17, 0.0  ;;  %v251_v25 = vmul.f32 0.2, %v235_v17 }
  0x15   : > { %vm244_vm2 = vcmp.gt.f32.partialorder %v236_v18, 0.0  ;;  %v252_v26 = vmul.f32 0.2, %v236_v18  ;;  %vm245_vm3 = vcmp.gt.f32.partialorder %v237_v20, 0.0  ;;  %v253_v27 = vmul.f32 0.2, %v237_v20 }
  0x16   : > { %v258_v28 = vsel %vm242_vm0, %v234_v16, %v250_v24  ;;  %v259_v29 = vsel %vm243_vm1, %v235_v17, %v251_v25  ;;  %vm246_vm4 = vcmp.gt.f32.partialorder %v238_v21, 0.0  ;;  %v254_v30 = vmul.f32 0.2, %v238_v21 }
  0x17   : > { %266 = vst [vmem:[%s474_s26] sm:$0xff] %v258_v28  ;;  %v260_v31 = vsel %vm244_vm2, %v236_v18, %v252_v26  ;;  %v261_v32 = vsel %vm245_vm3, %v237_v20, %v253_v27  ;;  %vm247_vm5 = vcmp.gt.f32.partialorder %v239_v22, 0.0  ;;  %v255_v33 = vmul.f32 0.2, %v239_v22 }
  0x18   : > { %267 = vst [vmem:[%s474_s26 + $0x8] sm:$0xff] %v259_v29  ;;  %v262_v34 = vsel %vm246_vm4, %v238_v21, %v254_v30  ;;  %v240_v35 = vadd.f32 %v399_v1, %v229_v19  ;;  %v241_v36 = vadd.f32 %v399_v1, %v230_v23 }
  0x19   : > { %268 = vst [vmem:[%s474_s26 + $0x10] sm:$0xff] %v260_v31  ;;  %v263_v37 = vsel %vm247_vm5, %v239_v22, %v255_v33 }
  0x1a   : > { %269 = vst [vmem:[%s474_s26 + $0x18] sm:$0xff] %v261_v32  ;;  %vm248_vm6 = vcmp.gt.f32.partialorder %v240_v35, 0.0  ;;  %v256_v38 = vmul.f32 0.2, %v240_v35  ;;  %vm249_vm7 = vcmp.gt.f32.partialorder %v241_v36, 0.0 }
  0x1b   : > { %270 = vst [vmem:[%s474_s26 + $0x20] sm:$0xff] %v262_v34  ;;  %v257_v39 = vmul.f32 0.2, %v241_v36 }
  0x1c   : > { %271 = vst [vmem:[%s474_s26 + $0x28] sm:$0xff] %v263_v37  ;;  %v264_v40 = vsel %vm248_vm6, %v240_v35, %v256_v38 }
  0x1d   : > { %272 = vst [vmem:[%s474_s26 + $0x30] sm:$0xff] %v264_v40  ;;  %v265_v41 = vsel %vm249_vm7, %v241_v36, %v257_v39 }
  0x1e   : > { %273 = vst [vmem:[%s474_s26 + $0x38] sm:$0xff] %v265_v41 }
  0x1f PF: > { %s13_s14 = sadd.s32 1, %s422_s14   ;;  %s497_s12 = smov %s418_s13 }
  0x20   : > { %p10_p5 = scmp.ge.s32.totalorder %s13_s14, 4   ;;  %s498_s13 = smov %s500_s15 }
  0x22   :  { %12 = sbr.rel (!%p10_p5) target bundleno = 2 (0x2), region = 62 }

// kernel: conv_block_forward.2
= control target key start
LH: loop header
LB: loop body
LE: loop exit
PB: predicated region body
PF: predicated region fallthrough
CT: control target
= control target key end

     0   :  { %s847_s12 = smov 0   ;;  %s849_s13 = smov 0   ;;  %s974_s0 = inlined_call_operand.vmem [shape: f32[2,9,9,16], index: 0, kind: input, shape index: {}]   ;;  %s975_s1 = inlined_call_operand.vmem [shape: f32[2,2,16,128], index: 1, kind: input, shape index: {}]   ;;  %s976_s2 = inlined_call_operand.vmem [shape: f32[2,8,8,128], index: 2, kind: output, shape index: {0}]   ;;  %s977_s3 = inlined_call_operand.vmem [shape: f32[2,1,2,128], index: 3, kind: output, shape index: {1}]  }
   0x1   :  { %s851_s14 = smov 0  }
   0x2 LB: > { %s26_s15 = sadd.s32 1, %s821_s13  ;;  %p716_p0 = scmp.ge.s32.totalorder %s825_s14, 1  ;;  %s825_s14 = sphi %s851_s14, %s14_s14   ;;  %s821_s13 = sphi %s849_s13, %s979_s13   ;;  %s817_s12 = sphi %s847_s12, %s978_s12  }
   0x3   : > { %p28_p1 = scmp.ge.s32.totalorder %s26_s15, 2  ;;  %p156_p2 = scmp.lt.s32.totalorder %s825_s14, 3 }
   0x5   : > { %s981_s15 = smov (%p28_p1, %s26_s15), 0  ;;  %p157_p3 = pnand %p716_p0, %p156_p2 }
   0x6   : > { %p191_p4 = scmp.lt.s32.totalorder (!%p157_p3), %s817_s12, 1 }
   0x7   : > { %160 = sbr.rel (%p157_p3) target bundleno = 227 (0xe3), region = 28 }
   0xc   : > { %v748_v0 = vld [vmem:[%s975_s1 + $0x28] sm:$0xff]  ;;  %v747_v1 = vld [vmem:[%s975_s1 + $0x20] sm:$0xff]  ;;  %v766_v2 = vld [vmem:[%s975_s1 + $0x38] sm:$0xff]  ;;  %s983_s12 = smov (!%p191_p4, %s817_s12), 1  ;;  %vm237_vm0 = vcmask 130048   ;;  %vm581_vm1 = vcmask 1040384  }
   0xd   : > { %420 = vmatpush.msra.mxu2 %v748_v0  ;;  %504 = vmatpush.msra.mxu3 %v766_v2  ;;  %v722_v3 = vld [vmem:[%s975_s1 + $0x18] sm:$0xff]  ;;  %v225_v4 = vld [vmem:[%s975_s1 + $0x8] sm:$0xff]  ;;  %v765_v5 = vld [vmem:[%s975_s1 + $0x30] sm:$0xff]  ;;  %s778_s5 = smul.u32 144, %s983_s12  ;;  %s777_s9 = sshll.u32 %s983_s12, 6 }
   0xe   : > { %276 = vmatpush.msra.mxu0 %v722_v3  ;;  %341 = vmatpush.msra.mxu1 %v225_v4  ;;  %v721_v6 = vld [vmem:[%s975_s1 + $0x10] sm:$0xff]  ;;  %v224_v7 = vld [vmem:[%s975_s1] sm:$0xff]  ;;  %s951_s16 = scalar_lea.vmem %s976_s2, %s777_s9  ;;  %s720_s17 = sshll.u32 %s983_s12, 1 }
   0xf   : > { %421 = vmatpush.msra.mxu2 %v747_v1  ;;  %505 = vmatpush.msra.mxu3 %v765_v5  ;;  %s895_s8 = scalar_lea.vmem %s974_s0, %s778_s5  ;;  %s212_s20 = scalar_lea.vmem %s977_s3, %s720_s17 }
  0x10   : > { %277 = vmatpush.msra.mxu0 %v721_v6  ;;  %342 = vmatpush.msra.mxu1 %v224_v7  ;;  %v739_v8 = vld [vmem:[%s895_s8 + $0x10] sm:$0xff]  ;;  %v226_v10 = vld [vmem:[%s895_s8 + $0x1] sm:$0xff] }
  0x11   : > { %v757_v9 = vld [vmem:[%s895_s8 + $0x11] sm:$0xff]  ;;  %749 = vmatmul.msk.f32.vlgmr.msra.gmra.mxu2 %vm237_vm0, %v739_v8  ;;  %v216_v11 = vld [vmem:[%s895_s8] sm:$0xff]  ;;  %723 = vmatmul.msk.f32.vlgmr.msra.gmra.mxu0 %vm237_vm0, %v226_v10 }
  0x12   : > { %767 = vmatmul.msk.f32.vlgmr.msra.gmra.mxu3 %vm237_vm0, %v757_v9  ;;  %731 = vmatmul.msk.f32.vlgmr.msra.gmra.mxu1 %vm237_vm0, %v216_v11  ;;  %v740_v12 = vld [vmem:[%s895_s8 + $0x20] sm:$0xff]  ;;  %v741_v14 = vld [vmem:[%s895_s8 + $0x30] sm:$0xff] }
  0x13   : > { %v758_v13 = vld [vmem:[%s895_s8 + $0x21] sm:$0xff]  ;;  %v759_v15 = vld [vmem:[%s895_s8 + $0x31] sm:$0xff] }
  0x14   : > { %v742_v16 = vld [vmem:[%s895_s8 + $0x40] sm:$0xff]  ;;  %v743_v18 = vld [vmem:[%s895_s8 + $0x50] sm:$0xff] }
  0x15   : > { %v760_v17 = vld [vmem:[%s895_s8 + $0x41] sm:$0xff]  ;;  %v761_v19 = vld [vmem:[%s895_s8 + $0x51] sm:$0xff] }
  0x16   : > { %v744_v20 = vld [vmem:[%s895_s8 + $0x60] sm:$0xff]  ;;  %v745_v22 = vld [vmem:[%s895_s8 + $0x70] sm:$0xff] }
  0x17   : > { %v762_v21 = vld [vmem:[%s895_s8 + $0x61] sm:$0xff]  ;;  %v763_v23 = vld [vmem:[%s895_s8 + $0x71] sm:$0xff] }
  0x18   : > { %v746_v24 = vld [vmem:[%s895_s8 + $0x80] sm:$0xff] }
  0x19   : > { %750 = vmatmul.msk.f32.gmra.mxu2 %vm237_vm0, %v740_v12  ;;  %724 = vmatmul.msk.f32.gmra.mxu0 %vm237_vm0, %v757_v9  ;;  %v764_v25 = vld [vmem:[%s895_s8 + $0x81] sm:$0xff] }
  0x1a   : > { %768 = vmatmul.msk.f32.gmra.mxu3 %vm237_vm0, %v758_v13  ;;  %732 = vmatmul.msk.f32.gmra.mxu1 %vm237_vm0, %v739_v8 }
  0x21   : > { %751 = vmatmul.msk.f32.gmra.mxu2 %vm237_vm0, %v741_v14  ;;  %725 = vmatmul.msk.f32.gmra.mxu0 %vm237_vm0, %v758_v13 }
  0x22   : > { %769 = vmatmul.msk.f32.gmra.mxu3 %vm237_vm0, %v759_v15  ;;  %733 = vmatmul.msk.f32.gmra.mxu1 %vm237_vm0, %v740_v12 }
  0x29   : > { %752 = vmatmul.msk.f32.gmra.mxu2 %vm237_vm0, %v742_v16  ;;  %726 = vmatmul.msk.f32.gmra.mxu0 %vm237_vm0, %v759_v15 }
  0x2a   : > { %770 = vmatmul.msk.f32.gmra.mxu3 %vm237_vm0, %v760_v17  ;;  %734 = vmatmul.msk.f32.gmra.mxu1 %vm237_vm0, %v741_v14 }
  0x31   : > { %753 = vmatmul.msk.f32.gmra.mxu2 %vm237_vm0, %v743_v18  ;;  %727 = vmatmul.msk.f32.gmra.mxu0 %vm237_vm0, %v760_v17 }
  0x32   : > { %771 = vmatmul.msk.f32.gmra.mxu3 %vm237_vm0, %v761_v19  ;;  %735 = vmatmul.msk.f32.gmra.mxu1 %vm237_vm0, %v742_v16 }
  0x39   : > { %754 = vmatmul.msk.f32.gmra.mxu2 %vm237_vm0, %v744_v20  ;;  %728 = vmatmul.msk.f32.gmra.mxu0 %vm237_vm0, %v761_v19 }
  0x3a   : > { %772 = vmatmul.msk.f32.gmra.mxu3 %vm237_vm0, %v762_v21  ;;  %736 = vmatmul.msk.f32.gmra.mxu1 %vm237_vm0, %v743_v18 }
  0x41   : > { %755 = vmatmul.msk.f32.gmra.mxu2 %vm237_vm0, %v745_v22  ;;  %729 = vmatmul.msk.f32.gmra.mxu0 %vm237_vm0, %v762_v21 }
  0x42   : > { %773 = vmatmul.msk.f32.gmra.mxu3 %vm237_vm0, %v763_v23  ;;  %737 = vmatmul.msk.f32.gmra.mxu1 %vm237_vm0, %v744_v20 }
  0x49   : > { %756 = vmatmul.msk.f32.gmra.mxu2 %vm237_vm0, %v746_v24  ;;  %730 = vmatmul.msk.f32.gmra.mxu0 %vm237_vm0, %v763_v23 }
  0x4a   : > { %774 = vmatmul.msk.f32.gmra.mxu3 %vm237_vm0, %v764_v25  ;;  %738 = vmatmul.msk.f32.gmra.mxu1 %vm237_vm0, %v745_v22 }
  0x8e   : > { %v279_v26 = vpop.f32.mrf.mxu0 }
  0x8f   : > { %v344_v27 = vpop.f32.mrf.mxu1 }
  0x90   : > { %v345_v28 = vadd.f32 %v344_v27, %v279_v26 }
  0x94   : > { %v423_v29 = vpop.f32.mrf.mxu2 }
  0x95   : > { %v507_v30 = vpop.f32.mrf.mxu3  ;;  %v447_v31 = vadd.f32 %v423_v29, %v345_v28 }
  0x96   : > { %v282_v33 = vpop.f32.mrf.mxu0 }
  0x97   : > { %v531_v32 = vadd.f32 %v507_v30, %v447_v31  ;;  %v347_v34 = vpop.f32.mrf.mxu1 }
  0x98   : > { %v348_v35 = vadd.f32 %v347_v34, %v282_v33 }
  0x99   : > { %539 = vst [vmem:[%s951_s16] sm:$0xff] %v531_v32  ;;  %v560_v10 = vmul.f32 %v531_v32, %v531_v32 }
  0x9c   : > { %v426_v36 = vpop.f32.mrf.mxu2 }
  0x9d   : > { %v510_v37 = vpop.f32.mrf.mxu3  ;;  %v448_v38 = vadd.f32 %v426_v36, %v348_v35 }
  0x9e   : > { %v285_v40 = vpop.f32.mrf.mxu0 }
  0x9f   : > { %v532_v39 = vadd.f32 %v510_v37, %v448_v38  ;;  %v350_v41 = vpop.f32.mrf.mxu1 }
  0xa0   : > { %v351_v42 = vadd.f32 %v350_v41, %v285_v40 }
  0xa1   : > { %540 = vst [vmem:[%s951_s16 + $0x8] sm:$0xff] %v532_v39  ;;  %v561_v7 = vmul.f32 %v532_v39, %v532_v39  ;;  %v547_v11 = vadd.f32 %v532_v39, %v531_v32 }
  0xa3   : > { %v568_v14 = vadd.f32 %v561_v7, %v560_v10 }
  0xa4   : > { %v429_v43 = vpop.f32.mrf.mxu2 }
  0xa5   : > { %v513_v44 = vpop.f32.mrf.mxu3  ;;  %v449_v45 = vadd.f32 %v429_v43, %v351_v42 }
  0xa6   : > { %v288_v47 = vpop.f32.mrf.mxu0 }
  0xa7   : > { %v533_v46 = vadd.f32 %v513_v44, %v449_v45  ;;  %v353_v48 = vpop.f32.mrf.mxu1 }
  0xa8   : > { %v354_v49 = vadd.f32 %v353_v48, %v288_v47 }
  0xa9   : > { %541 = vst [vmem:[%s951_s16 + $0x10] sm:$0xff] %v533_v46  ;;  %v562_v12 = vmul.f32 %v533_v46, %v533_v46  ;;  %v548_v15 = vadd.f32 %v547_v11, %v533_v46 }
  0xab   : > { %v569_v20 = vadd.f32 %v568_v14, %v562_v12 }
  0xac   : > { %v432_v50 = vpop.f32.mrf.mxu2 }
  0xad   : > { %v516_v51 = vpop.f32.mrf.mxu3  ;;  %v450_v52 = vadd.f32 %v432_v50, %v354_v49 }
  0xae   : > { %v291_v54 = vpop.f32.mrf.mxu0 }
  0xaf   : > { %v534_v53 = vadd.f32 %v516_v51, %v450_v52  ;;  %v356_v55 = vpop.f32.mrf.mxu1 }
  0xb0   : > { %v357_v56 = vadd.f32 %v356_v55, %v291_v54 }
  0xb1   : > { %542 = vst [vmem:[%s951_s16 + $0x18] sm:$0xff] %v534_v53  ;;  %v563_v16 = vmul.f32 %v534_v53, %v534_v53  ;;  %v549_v21 = vadd.f32 %v548_v15, %v534_v53 }
  0xb3   : > { %v570_v24 = vadd.f32 %v569_v20, %v563_v16 }
  0xb4   : > { %v435_v57 = vpop.f32.mrf.mxu2 }
  0xb5   : > { %v519_v58 = vpop.f32.mrf.mxu3  ;;  %v451_v59 = vadd.f32 %v435_v57, %v357_v56 }
  0xb6   : > { %v294_v61 = vpop.f32.mrf.mxu0 }
  0xb7   : > { %v535_v60 = vadd.f32 %v519_v58, %v451_v59  ;;  %v359_v62 = vpop.f32.mrf.mxu1 }
  0xb8   : > { %v360_v63 = vadd.f32 %v359_v62, %v294_v61 }
  0xb9   : > { %543 = vst [vmem:[%s951_s16 + $0x20] sm:$0xff] %v535_v60  ;;  %v564_v22 = vmul.f32 %v535_v60, %v535_v60  ;;  %v550_v25 = vadd.f32 %v549_v21, %v535_v60 }
  0xbb   : > { %v571_v29 = vadd.f32 %v570_v24, %v564_v22 }
  0xbc   : > { %v438_v0 = vpop.f32.mrf.mxu2 }
  0xbd   : > { %v522_v1 = vpop.f32.mrf.mxu3  ;;  %v452_v2 = vadd.f32 %v438_v0, %v360_v63 }
  0xbe   : > { %v297_v4 = vpop.f32.mrf.mxu0 }
  0xbf   : > { %v536_v3 = vadd.f32 %v522_v1, %v452_v2  ;;  %v362_v5 = vpop.f32.mrf.mxu1 }
  0xc0   : > { %v363_v6 = vadd.f32 %v362_v5, %v297_v4 }
  0xc1   : > { %544 = vst [vmem:[%s951_s16 + $0x28] sm:$0xff] %v536_v3  ;;  %v565_v26 = vmul.f32 %v536_v3, %v536_v3  ;;  %v551_v30 = vadd.f32 %v550_v25, %v536_v3 }
  0xc3   : > { %v572_v33 = vadd.f32 %v571_v29, %v565_v26 }
  0xc4   : > { %v441_v8 = vpop.f32.mrf.mxu2 }
  0xc5   : > { %v525_v9 = vpop.f32.mrf.mxu3  ;;  %v453_v13 = vadd.f32 %v441_v8, %v363_v6 }
  0xc6   : > { %v300_v18 = vpop.f32.mrf.mxu0 }
  0xc7   : > { %v537_v17 = vadd.f32 %v525_v9, %v453_v13  ;;  %v365_v19 = vpop.f32.mrf.mxu1 }
  0xc8   : > { %v366_v23 = vadd.f32 %v365_v19, %v300_v18 }
  0xc9   : > { %545 = vst [vmem:[%s951_s16 + $0x30] sm:$0xff] %v537_v17  ;;  %v566_v31 = vmul.f32 %v537_v17, %v537_v17  ;;  %v552_v34 = vadd.f32 %v551_v30, %v537_v17 }
  0xcb   : > { %v573_v36 = vadd.f32 %v572_v33, %v566_v31 }
  0xcc   : > { %v444_v27 = vpop.f32.mrf.mxu2 }
  0xcd   : > { %v528_v28 = vpop.f32.mrf.mxu3  ;;  %v454_v32 = vadd.f32 %v444_v27, %v366_v23 }
  0xcf   : > { %v538_v35 = vadd.f32 %v528_v28, %v454_v32 }
  0xd1   : > { %546 = vst [vmem:[%s951_s16 + $0x38] sm:$0xff] %v538_v35  ;;  %v553_v37 = vadd.f32 %v552_v34, %v538_v35  ;;  %v567_v38 = vmul.f32 %v538_v35, %v538_v35 }
  0xd3   : > { %v554_v39 = vrot.slane %v553_v37, 4  ;;  %v574_v40 = vadd.f32 %v573_v36, %v567_v38 }
  0xd5   : > { %v555_v41 = vadd.f32 %v554_v39, %v553_v37  ;;  %v575_v42 = vrot.slane %v574_v40, 4 }
  0xd7   : > { %v556_v43 = vrot.slane %v555_v41, 2  ;;  %v576_v44 = vadd.f32 %v575_v42, %v574_v40 }
  0xd9   : > { %v557_v45 = vadd.f32 %v556_v43, %v555_v41  ;;  %v577_v46 = vrot.slane %v576_v44, 2 }
  0xdb   : > { %v558_v47 = vrot.slane %v557_v45, 1  ;;  %v578_v48 = vadd.f32 %v577_v46, %v576_v44 }
  0xdd   : > { %v579_v49 = vrot.slane %v578_v48, 1  ;;  %v559_v50 = vadd.f32 %v558_v47, %v557_v45 }
  0xdf   : > { %v580_v51 = vadd.f32 %v579_v49, %v578_v48 }
  0xe1   : > { %v582_v52 = vsel %vm581_vm1, %v559_v50, %v580_v51 }
  0xe2   : > { %583 = vst [vmem:[%s212_s20] sm:$0x3] %v582_v52 }
  0xe3 PF: > { %s14_s14 = sadd.s32 1, %s825_s14   ;;  %s978_s12 = smov %s821_s13 }
  0xe4   : > { %p11_p5 = scmp.ge.s32.totalorder %s14_s14, 4   ;;  %s979_s13 = smov %s981_s15 }
  0xe6   :  { %13 = sbr.rel (!%p11_p5) target bundleno = 2 (0x2), region = 75 }

</bundles_post_ra>
